<compile_context>
chip_gen: v5e
topology: v5e:2x2
jax: 0.10.0
libtpu: 0.0.40
codegen_flags: <defaults>
</compile_context>

<pallas_src>
import functools
import math

import jax
import jax.numpy as jnp
from jax.experimental import pallas as pl
from jax.experimental.pallas import tpu as pltpu

NEIGHBORHOOD_SIZE = 5


def _round_up(x, m):
    return ((x + m - 1) // m) * m


def _choose_pack(K, out_features, itemsize, weight_vmem_cap=2 << 20):
    """Lane-dense packing factor: fold `pack` tets into one output row so the
    output last dim (pack*out_features) is a multiple of 128 (full-lane vst)."""
    g = math.gcd(out_features, 128)
    pack = 128 // g
    # Keep the block-diagonal (kron) weight a small VMEM-resident block.
    if pack > 1 and (pack * K) * (pack * out_features) * itemsize > weight_vmem_cap:
        pack = 1
    return pack


def _choose_tiles(packed_T, row_bytes, *, tile_target_bytes, min_rows=16):
    """Balanced tile size (multiple of min_rows sublanes) from a VMEM byte
    target; force >=2 grid steps when there is enough work (v7x megacore)."""
    packed_T = max(int(packed_T), 1)
    max_rows = max(min_rows, (tile_target_bytes // max(row_bytes, 1)) // min_rows * min_rows)
    n_tiles = pl.cdiv(packed_T, max_rows)
    if packed_T >= 2 * min_rows:
        n_tiles = max(n_tiles, 2)
    tile = _round_up(pl.cdiv(packed_T, n_tiles), min_rows)
    padded = _round_up(packed_T, tile)
    return tile, padded


def _mcc_kernel(x_ref, w_ref, b_ref, o_ref):
    # x_ref: (TM, pack*5F)   bf16  (pack tets folded per row)
    # w_ref: (pack*5F, pack*out)   block-diagonal replication of W, bf16 (resident)
    # b_ref: (1, pack*out)   f32   (resident)
    # o_ref: (TM, pack*out)  bf16  lane-dense (pack*out is a multiple of 128)
    y = jnp.dot(x_ref[...], w_ref[...], preferred_element_type=jnp.float32)
    o_ref[...] = jnp.maximum(y + b_ref[...], 0.0).astype(o_ref.dtype)


def mother_cube_conv(features, neighbor_idx, weight, bias, *,
                     compute_dtype=jnp.bfloat16, out_dtype=jnp.bfloat16,
                     tile_target_bytes=10 << 20):
    """features:     (T, in_features) f32
       neighbor_idx: (T, 4) int32; missing neighbors already padded with the
                     tet's own index (matches the PyTorch padding-with-self).
       weight:       (5*in_features, out_features) f32  (= lin.weight.T)
       bias:         (out_features,) f32
       returns:      new per-tet features, (T, out_features) out_dtype
    """
    T, F = features.shape
    K = NEIGHBORHOOD_SIZE * F
    out_features = weight.shape[1]
    in_isz = jnp.dtype(compute_dtype).itemsize
    out_isz = jnp.dtype(out_dtype).itemsize

    # ---- glue: neighborhood gather + concat (the per-tet Python loop), done
    # in compute_dtype so the XLA gather moves half the HBM bytes ----
    feats_c = features.astype(compute_dtype)
    self_feats = feats_c[:, None, :]                          # (T, 1, F)
    nbr_feats = jnp.take(feats_c, neighbor_idx, axis=0)       # (T, 4, F)
    x5 = jnp.concatenate([self_feats, nbr_feats], axis=1).reshape(T, K)

    # ---- lane-dense packing: fold `pack` tets into one 128-lane-multiple row ----
    pack = _choose_pack(K, out_features, in_isz)
    kp = pack * K
    np_ = pack * out_features

    packed_T = pl.cdiv(T, pack)
    row_bytes = kp * in_isz + np_ * out_isz
    tile, padded_packed = _choose_tiles(packed_T, row_bytes,
                                        tile_target_bytes=tile_target_bytes)

    pad_rows = padded_packed * pack - T
    if pad_rows:
        x5 = jnp.pad(x5, ((0, pad_rows), (0, 0)))
    x_packed = x5.reshape(padded_packed, kp)                  # pure row-major view

    # Block-diagonal weight so each packed slot only sees its own tet's inputs.
    w_bd = jnp.kron(jnp.eye(pack, dtype=compute_dtype), weight.astype(compute_dtype))
    b_wide = jnp.tile(bias.astype(jnp.float32), pack).reshape(1, np_)

    grid = (padded_packed // tile,)

    # VMEM budget: double-buffered x/out tiles + (possibly double-buffered)
    # resident weight + bias + headroom; kept under v7x's scoped VMEM.
    tile_bytes = tile * kp * in_isz + tile * np_ * out_isz
    footprint = 2 * tile_bytes + 2 * (kp * np_ * in_isz) + 2 * (np_ * 4) + (2 << 20)
    vmem_limit = int(min(max(footprint, 4 << 20), 32 << 20))

    cost = pl.CostEstimate(
        flops=2 * padded_packed * kp * np_,
        transcendentals=0,
        bytes_accessed=(padded_packed * kp * in_isz + kp * np_ * in_isz
                        + np_ * 4 + padded_packed * np_ * out_isz),
    )

    out_padded = pl.pallas_call(
        _mcc_kernel,
        out_shape=jax.ShapeDtypeStruct((padded_packed, np_), out_dtype),
        grid=grid,
        in_specs=[
            pl.BlockSpec((tile, kp), lambda i: (i, 0)),
            pl.BlockSpec((kp, np_), lambda i: (0, 0)),        # resident weight
            pl.BlockSpec((1, np_), lambda i: (0, 0)),         # resident bias
        ],
        out_specs=pl.BlockSpec((tile, np_), lambda i: (i, 0)),
        compiler_params=pltpu.CompilerParams(
            dimension_semantics=("parallel",),
            vmem_limit_bytes=vmem_limit,
        ),
        cost_estimate=cost,
    )(x_packed, w_bd, b_wide)

    # Unpack lane-dense rows back to (T, out_features) and drop padding.
    return out_padded.reshape(padded_packed * pack, out_features)[:T]


def _reference(features, neighbor_idx, weight, bias, compute_dtype=jnp.bfloat16):
    T, F = features.shape
    self_feats = features[:, None, :]
    nbr_feats = jnp.take(features, neighbor_idx, axis=0)
    x5 = jnp.concatenate([self_feats, nbr_feats], axis=1).reshape(T, -1)
    y = jnp.dot(x5.astype(compute_dtype), weight.astype(compute_dtype),
                preferred_element_type=jnp.float32)
    return jnp.maximum(y + bias.astype(jnp.float32), 0.0)


def _make_case(key, T, in_features, out_features):
    k_feat, k_w, k_b, k_nbr = jax.random.split(key, 4)
    features = jax.random.normal(k_feat, (T, in_features), dtype=jnp.float32)

    # Neighbor indices (4 per tet); simulate missing neighbors by padding with
    # the tet's own index (matches the module's padding-with-self).
    nbr = jax.random.randint(k_nbr, (T, 4), 0, T).astype(jnp.int32)
    self_idx = jnp.arange(T, dtype=jnp.int32)[:, None]
    pad_mask = jnp.zeros((T, 4), dtype=bool)
    pad_mask = pad_mask.at[0, 2:].set(True).at[1, 3:].set(True)
    neighbor_idx = jnp.where(pad_mask, jnp.broadcast_to(self_idx, (T, 4)), nbr)

    fan_in = NEIGHBORHOOD_SIZE * in_features
    bound = 1.0 / jnp.sqrt(jnp.float32(fan_in))
    weight = jax.random.uniform(k_w, (fan_in, out_features),
                                minval=-bound, maxval=bound, dtype=jnp.float32)
    bias = jax.random.uniform(k_b, (out_features,),
                              minval=-bound, maxval=bound, dtype=jnp.float32)
    return features, neighbor_idx, weight, bias


def _check(out, ref, name):
    assert out.shape == ref.shape, f"{name}: shape {out.shape} vs {ref.shape}"
    ok = jnp.allclose(out.astype(jnp.float32), ref, atol=2e-2, rtol=2e-2)
    assert ok, f"{name}: mismatch vs reference"


if __name__ == "__main__":
    conv = jax.jit(functools.partial(mother_cube_conv))
    key = jax.random.PRNGKey(0)
    k1, k2, k3 = jax.random.split(key, 3)

    # Case 1: small mother cube, out_features=32 (lane-dense pack=4, np_=128).
    feats, nbrs, w, b = _make_case(k1, T=64, in_features=4, out_features=32)
    out = jax.block_until_ready(conv(feats, nbrs, w, b))
    _check(out, _reference(feats, nbrs, w, b), "case1")

    # Case 2: ragged T (exercises padding/unpadding path).
    feats2, nbrs2, w2, b2 = _make_case(k2, T=13, in_features=3, out_features=32)
    out2 = jax.block_until_ready(conv(feats2, nbrs2, w2, b2))
    _check(out2, _reference(feats2, nbrs2, w2, b2), "case2")

    # Case 3: out_features=48 (generalized gcd-based pack=8, np_=384) and a
    # multi-step grid (>=2 tiles) for the megacore path.
    feats3, nbrs3, w3, b3 = _make_case(k3, T=300, in_features=6, out_features=48)
    out3 = jax.block_until_ready(conv(feats3, nbrs3, w3, b3))
    _check(out3, _reference(feats3, nbrs3, w3, b3), "case3")

    print("KERNEL_OK")
</pallas_src>

<mosaic_0001>
module attributes {stable_mosaic.version = 11 : i64} {
  func.func @_mcc_kernel(%arg0: i32, %arg1: memref<16x80xbf16, #tpu.memory_space<vmem>>, %arg2: memref<80x128xbf16, #tpu.memory_space<vmem>>, %arg3: memref<1x128xf32, #tpu.memory_space<vmem>>, %arg4: memref<16x128xbf16, #tpu.memory_space<vmem>>) attributes {dimension_semantics = [#tpu.dimension_semantics<parallel>], iteration_bounds = array<i64: 1>, scalar_prefetch = 0 : i64, scratch_operands = 0 : i64, tpu.core_type = #tpu.core_type<tc>, window_params = [{transform_indices = @transform_0, window_bounds = array<i64: 16, 80>}, {pipeline_mode = #tpu.pipeline_mode<synchronous>, transform_indices = @transform_1, window_bounds = array<i64: 80, 128>}, {pipeline_mode = #tpu.pipeline_mode<synchronous>, transform_indices = @transform_2, window_bounds = array<i64: 1, 128>}, {transform_indices = @transform_3, window_bounds = array<i64: 16, 128>}]} {
    %c0 = arith.constant 0 : index
    %c0_0 = arith.constant 0 : index
    %0 = vector.load %arg1[%c0, %c0_0] : memref<16x80xbf16, #tpu.memory_space<vmem>>, vector<16x80xbf16>
    %c0_1 = arith.constant 0 : index
    %c0_2 = arith.constant 0 : index
    %1 = vector.load %arg2[%c0_1, %c0_2] : memref<80x128xbf16, #tpu.memory_space<vmem>>, vector<80x128xbf16>
    %cst = arith.constant dense<0.000000e+00> : vector<16x128xf32>
    %2 = tpu.matmul %0, %1, %cst {dimension_numbers = #tpu.dot_dimension_numbers<[1], [0], [0], [1], [0, 0, 1, 1], [], []>} : vector<16x80xbf16>, vector<80x128xbf16>, vector<16x128xf32> -> vector<16x128xf32>
    %c0_3 = arith.constant 0 : index
    %c0_4 = arith.constant 0 : index
    %3 = vector.load %arg3[%c0_3, %c0_4] : memref<1x128xf32, #tpu.memory_space<vmem>>, vector<1x128xf32>
    %4 = vector.broadcast %3 : vector<1x128xf32> to vector<16x128xf32>
    %5 = arith.addf %2, %4 : vector<16x128xf32>
    %cst_5 = arith.constant 0.000000e+00 : f32
    %6 = vector.broadcast %cst_5 : f32 to vector<16x128xf32>
    %7 = arith.maximumf %5, %6 : vector<16x128xf32>
    %8 = arith.truncf %7 : vector<16x128xf32> to vector<16x128xbf16>
    %c0_6 = arith.constant 0 : index
    %c0_7 = arith.constant 0 : index
    %9 = vector.load %arg4[%c0_6, %c0_7] : memref<16x128xbf16, #tpu.memory_space<vmem>>, vector<16x128xbf16>
    tpu.vector_store %arg4[%c0_6, %c0_7], %8 {strides = array<i32>} : memref<16x128xbf16, #tpu.memory_space<vmem>>, vector<16x128xbf16>,
    return
  }
  func.func @transform_0(%arg0: i32) -> (i32, i32) {
    %c0_i32 = arith.constant 0 : i32
    %c0_i32_0 = arith.constant 0 : i32
    return %arg0, %c0_i32 : i32, i32
  }
  func.func @transform_1(%arg0: i32) -> (i32, i32) {
    %c0_i32 = arith.constant 0 : i32
    %c0_i32_0 = arith.constant 0 : i32
    %c0_i32_1 = arith.constant 0 : i32
    return %c0_i32, %c0_i32_0 : i32, i32
  }
  func.func @transform_2(%arg0: i32) -> (i32, i32) {
    %c0_i32 = arith.constant 0 : i32
    %c0_i32_0 = arith.constant 0 : i32
    %c0_i32_1 = arith.constant 0 : i32
    return %c0_i32, %c0_i32_0 : i32, i32
  }
  func.func @transform_3(%arg0: i32) -> (i32, i32) {
    %c0_i32 = arith.constant 0 : i32
    %c0_i32_0 = arith.constant 0 : i32
    return %arg0, %c0_i32 : i32, i32
  }
}

</mosaic_0001>

<bundles_post_ra>
// kernel: tile.8
= control target key start
LH: loop header
LB: loop body
LE: loop exit
PB: predicated region body
PF: predicated region fallthrough
CT: control target
= control target key end

     0   :  { %s22_s0 = inlined_call_operand.vmem [shape: f32[32], index: 0, kind: input, shape index: {}]   ;;  %s23_s1 = inlined_call_operand.vmem [shape: f32[4,32], index: 1, kind: output, shape index: {}]  }
   0x1   :  { %v4_v0 = vld [vmem:[%s22_s0] ss:$0 sm:$0xff] }
   0x2   :  { %5 = vst [vmem:[%s23_s1] sm:$0xf] %v4_v0 }

// kernel: tile.9
= control target key start
LH: loop header
LB: loop body
LE: loop exit
PB: predicated region body
PF: predicated region fallthrough
CT: control target
= control target key end

     0   :  { %s37_s8 = smov 32   ;;  %s38_s9 = smov 64   ;;  %vm7_vm0 = vcmask 261120   ;;  %vm13_vm1 = vcmask 1048320   ;;  %vm19_vm2 = vcmask 785920   ;;  %vm25_vm3 = vcmask 523520   ;;  %s55_s0 = inlined_call_operand.vmem [shape: f32[4,32], index: 0, kind: input, shape index: {}]   ;;  %s56_s1 = inlined_call_operand.vmem [shape: f32[1,128], index: 1, kind: output, shape index: {}]  }
   0x1   :  { %v4_v0 = vld [vmem:[%s55_s0] sm:$0xf]  ;;  %s36_s0 = smov 96  }
   0x2   :  { %5 = vst [vmem:[#allocation1] sm:$0xf] %v4_v0 }
   0x9   :  { %v10_v1 = vld [vmem:[#allocation1 + $0x3] sm:$0x1]   ;;  %v22_v2 = vld [vmem:[#allocation1 + $0x1] sm:$0x1]   ;;  %v16_v3 = vld [vmem:[#allocation1 + $0x2] sm:$0x1]  }
   0xa   :  { %11 = vrot.lane.b32.xlu0 %v10_v1, %s36_s0  ;;  %23 = vrot.lane.b32.xlu1 %v22_v2, %s37_s8  ;;  %v6_v4 = vld [vmem:[#allocation1] sm:$0x1]  }
   0xb   :  { %8 = vst.msk [vmem:[#allocation0] sm:$0x1] %vm7_vm0, %v6_v4  }
  0x12   :  { %17 = vrot.lane.b32.xlu0 %v16_v3, %s38_s9 }
  0x7c   :  { %v12_v5 = vpop.permute.xlu0 %11   ;;  %v24_v6 = vpop.permute.xlu1 %23  }
  0x7d   :  { %14 = vst.msk [vmem:[#allocation0] sm:$0x1] %vm13_vm1, %v12_v5  }
  0x84   :  { %v18_v7 = vpop.permute.xlu0 %17  }
  0x85   :  { %20 = vst.msk [vmem:[#allocation0] sm:$0x1] %vm19_vm2, %v18_v7  }
  0x86   :  { %26 = vst.msk [vmem:[#allocation0] sm:$0x1] %vm25_vm3, %v24_v6  }
  0x8d   :  { %v29_v8 = vld [vmem:[#allocation0] sm:$0x1] }
  0x8e   :  { %32 = vst [vmem:[%s56_s1] sm:$0x1] %v29_v8 }

// kernel: mother_cube_conv.1
= control target key start
LH: loop header
LB: loop body
LE: loop exit
PB: predicated region body
PF: predicated region fallthrough
CT: control target
= control target key end

     0   :  { %vm66_vm0 = vcmask 654336   ;;  %s175_s1 = inlined_call_operand.vmem [shape: bf16[80,128], index: 1, kind: input, shape index: {}]   ;;  %s176_s2 = inlined_call_operand.vmem [shape: f32[1,128], index: 2, kind: input, shape index: {}]   ;;  %s177_s0 = inlined_call_operand.vmem [shape: bf16[16,80], index: 0, kind: input, shape index: {}]   ;;  %s178_s3 = inlined_call_operand.vmem [shape: bf16[16,128], index: 3, kind: output, shape index: {}]  }
   0x1   :  { %v124_v0 = vld [vmem:[%s175_s1 + $0x20] sm:$0xff]  ;;  %v123_v1 = vld [vmem:[%s175_s1 + $0x18] sm:$0xff]  ;;  %v122_v2 = vld [vmem:[%s175_s1 + $0x10] sm:$0xff] }
   0x2   :  { %73 = vmatpush.bf16.msra.mxu0 %v124_v0  ;;  %v121_v3 = vld [vmem:[%s175_s1 + $0x8] sm:$0xff]  ;;  %v120_v4 = vld [vmem:[%s175_s1] sm:$0xff] }
   0x3   :  { %v119_v5 = vld [vmem:[%s177_s0] sm:$0xff] }
   0x4   :  { %v130_v7 = vld [vmem:[%s176_s2] ss:$0 sm:$0xff] }
   0x6   :  { %74 = vmatpush.bf16.msra.mxu0 %v123_v1 }
   0xa   :  { %75 = vmatpush.bf16.msra.mxu0 %v122_v2 }
   0xe   :  { %76 = vmatpush.bf16.msra.mxu0 %v121_v3 }
  0x12   :  { %77 = vmatpush.bf16.msra.mxu0 %v120_v4 }
  0x15   :  { %118 = vmatmul.msk.bf16.vlgmr.msra.gmra.mxu0 %vm66_vm0, %v119_v5 }
  0x92   :  { %v79_v6 = vpop.f32.mrf.mxu0 }
  0x93   :  { %v80_v8 = vadd.f32 %v130_v7, %v79_v6 }
  0x95   :  { %v84_v11 = vmax.f32 %v80_v8, 0.0 }
  0x9a   :  { %v81_v9 = vpop.f32.mrf.mxu0 }
  0x9b   :  { %v82_v10 = vadd.f32 %v130_v7, %v81_v9 }
  0x9d   :  { %v85_v12 = vmax.f32 %v82_v10, 0.0 }
  0x9f   :  { %v128_v13 = vpack.c.bf16 %v85_v12, %v84_v11 }
  0xa1   :  { %129 = vst [vmem:[%s178_s3] sm:$0xff] %v128_v13  }

</bundles_post_ra>
